<compile_context>
chip_gen: v5e
topology: v5e:2x2
jax: 0.10.0
libtpu: 0.0.40
codegen_flags: <defaults>
</compile_context>

<pallas_src>
import functools

import jax
import jax.numpy as jnp
from jax.experimental import pallas as pl
from jax.experimental.pallas import tpu as pltpu

_VMEM_LIMIT = 48 * 1024 * 1024   # > default scoped VMEM on v5e/v6e/v7x, < physical on all chips
_LN_EPS = 1e-5                   # torch.nn.LayerNorm default


def _round_up(x, m):
    return (x + m - 1) // m * m


def _pad_rows(x2d, tm):
    rows = x2d.shape[0]
    rows_p = _round_up(rows, tm)
    if rows_p != rows:
        x2d = jnp.pad(x2d, ((0, rows_p - rows), (0, 0)))
    return x2d


# ------------------------------------------------------------------ linear --
def _linear_kernel(x_ref, w_ref, b_ref, o_ref):
    y = jnp.dot(x_ref[...], w_ref[...], preferred_element_type=jnp.float32)
    o_ref[...] = (y + b_ref[...]).astype(o_ref.dtype)


def linear(x2d, w, b, *, tm=256):
    rows, d_in = x2d.shape
    d_out = w.shape[1]
    tm = min(tm, _round_up(rows, 8))
    xp = _pad_rows(x2d, tm)
    rows_p = xp.shape[0]
    isz = x2d.dtype.itemsize
    out = pl.pallas_call(
        _linear_kernel,
        out_shape=jax.ShapeDtypeStruct((rows_p, d_out), x2d.dtype),
        grid_spec=pltpu.PrefetchScalarGridSpec(
            num_scalar_prefetch=0,
            grid=(rows_p // tm,),
            in_specs=[
                pl.BlockSpec((tm, d_in), lambda i: (i, 0)),
                pl.BlockSpec((d_in, d_out), lambda i: (0, 0)),
                pl.BlockSpec((1, d_out), lambda i: (0, 0)),
            ],
            out_specs=pl.BlockSpec((tm, d_out), lambda i: (i, 0)),
        ),
        compiler_params=pltpu.CompilerParams(
            dimension_semantics=("parallel",),
            vmem_limit_bytes=_VMEM_LIMIT),
        cost_estimate=pl.CostEstimate(
            flops=2 * rows_p * d_in * d_out,
            transcendentals=0,
            bytes_accessed=(rows_p * d_in + d_in * d_out + d_out + rows_p * d_out) * isz),
    )(xp, w, b.reshape(1, d_out))
    return out[:rows]


# --------------------------------------------------------------- attention --
def _attn_kernel(klen_ref, q_ref, k_ref, v_ref, o_ref):
    i = pl.program_id(0)
    q = q_ref[0]                                   # (S, dk)
    k = k_ref[0]
    v = v_ref[0]
    dk = q.shape[-1]
    s = jnp.dot(q, k.T, preferred_element_type=jnp.float32) * (1.0 / dk ** 0.5)
    col = jax.lax.broadcasted_iota(jnp.int32, s.shape, 1)
    s = jnp.where(col < klen_ref[i], s, -1e30)     # key-length mask
    m = jnp.max(s, axis=-1, keepdims=True)
    p = jnp.exp(s - m)
    denom = jnp.sum(p, axis=-1, keepdims=True)
    attn = p * pl.reciprocal(denom, approx=False)
    o = jnp.dot(attn.astype(v.dtype), v, preferred_element_type=jnp.float32)
    o_ref[0] = o.astype(o_ref.dtype)


def attention(qh, kh, vh, klens):
    # qh/kh/vh: (B*H, S, dk); klens: (B*H,) int32 (key length per head row)
    # TODO(synk): DotAttn source not provided; query_lens masking is not applied
    # (padded query rows are computed but normally ignored downstream).
    BH, S, dk = qh.shape
    return pl.pallas_call(
        _attn_kernel,
        out_shape=jax.ShapeDtypeStruct((BH, S, dk), qh.dtype),
        grid_spec=pltpu.PrefetchScalarGridSpec(
            num_scalar_prefetch=1,
            grid=(BH,),
            in_specs=[
                pl.BlockSpec((1, S, dk), lambda i, kl: (i, 0, 0)),
                pl.BlockSpec((1, S, dk), lambda i, kl: (i, 0, 0)),
                pl.BlockSpec((1, S, dk), lambda i, kl: (i, 0, 0)),
            ],
            out_specs=pl.BlockSpec((1, S, dk), lambda i, kl: (i, 0, 0)),
        ),
        compiler_params=pltpu.CompilerParams(
            dimension_semantics=("parallel",),
            vmem_limit_bytes=_VMEM_LIMIT),
    )(klens, qh, kh, vh)


# ------------------------------------------------------- residual + LayerNorm
def _add_ln_kernel(a_ref, b_ref, g_ref, bta_ref, o_ref):
    x = a_ref[...].astype(jnp.float32) + b_ref[...].astype(jnp.float32)
    mu = jnp.mean(x, axis=-1, keepdims=True)
    xc = x - mu
    var = jnp.mean(xc * xc, axis=-1, keepdims=True)
    y = xc * jax.lax.rsqrt(var + _LN_EPS)
    o_ref[...] = (y * g_ref[...] + bta_ref[...]).astype(o_ref.dtype)


def add_layer_norm(a2d, b2d, gamma, beta, *, tm=256):
    rows, d = a2d.shape
    tm = min(tm, _round_up(rows, 8))
    ap = _pad_rows(a2d, tm)
    bp = _pad_rows(b2d, tm)
    rows_p = ap.shape[0]
    out = pl.pallas_call(
        _add_ln_kernel,
        out_shape=jax.ShapeDtypeStruct((rows_p, d), a2d.dtype),
        grid_spec=pltpu.PrefetchScalarGridSpec(
            num_scalar_prefetch=0,
            grid=(rows_p // tm,),
            in_specs=[
                pl.BlockSpec((tm, d), lambda i: (i, 0)),
                pl.BlockSpec((tm, d), lambda i: (i, 0)),
                pl.BlockSpec((1, d), lambda i: (0, 0)),
                pl.BlockSpec((1, d), lambda i: (0, 0)),
            ],
            out_specs=pl.BlockSpec((tm, d), lambda i: (i, 0)),
        ),
        compiler_params=pltpu.CompilerParams(
            dimension_semantics=("parallel",),
            vmem_limit_bytes=_VMEM_LIMIT),
    )(ap, bp, gamma.reshape(1, d), beta.reshape(1, d))
    return out[:rows]


# -------------------------------------------------------- positionwise FFN --
def _ffn_kernel(x_ref, w1_ref, b1_ref, w2_ref, b2_ref, o_ref, acc_ref):
    j = pl.program_id(1)

    @pl.when(j == 0)
    def _():
        acc_ref[...] = jnp.zeros_like(acc_ref)

    h = jnp.dot(x_ref[...], w1_ref[...], preferred_element_type=jnp.float32)
    h = jnp.maximum(h + b1_ref[...], 0.0)
    # TODO(synk): dropout is identity (inference); training semantics would use
    # pltpu.prng_seed + pltpu.prng_random_bits masking here.
    h = h.astype(w2_ref.dtype)          # bf16 weights -> bf16 MXU input; no-op for f32
    acc_ref[...] += jnp.dot(h, w2_ref[...], preferred_element_type=jnp.float32)

    @pl.when(j == pl.num_programs(1) - 1)
    def _():
        o_ref[...] = (acc_ref[...] + b2_ref[...]).astype(o_ref.dtype)


def positionwise_ffn(x2d, w1, b1, w2, b2, *, tm=256, tf=512):
    rows, d_model = x2d.shape
    d_ff = w1.shape[1]
    tm = min(tm, _round_up(rows, 8))
    tf = min(tf, _round_up(d_ff, 128))
    xp = _pad_rows(x2d, tm)
    rows_p = xp.shape[0]
    d_ff_p = _round_up(d_ff, tf)
    if d_ff_p != d_ff:                  # zero-padded d_ff slice contributes zero
        w1 = jnp.pad(w1, ((0, 0), (0, d_ff_p - d_ff)))
        b1 = jnp.pad(b1, (0, d_ff_p - d_ff))
        w2 = jnp.pad(w2, ((0, d_ff_p - d_ff), (0, 0)))
    isz = x2d.dtype.itemsize
    out = pl.pallas_call(
        _ffn_kernel,
        out_shape=jax.ShapeDtypeStruct((rows_p, d_model), x2d.dtype),
        grid_spec=pltpu.PrefetchScalarGridSpec(
            num_scalar_prefetch=0,
            grid=(rows_p // tm, d_ff_p // tf),     # d_ff reduction axis last
            in_specs=[
                pl.BlockSpec((tm, d_model), lambda i, j: (i, 0)),
                pl.BlockSpec((d_model, tf), lambda i, j: (0, j)),
                pl.BlockSpec((1, tf), lambda i, j: (0, j)),
                pl.BlockSpec((tf, d_model), lambda i, j: (j, 0)),
                pl.BlockSpec((1, d_model), lambda i, j: (0, 0)),
            ],
            out_specs=pl.BlockSpec((tm, d_model), lambda i, j: (i, 0)),
            scratch_shapes=[pltpu.VMEM((tm, d_model), jnp.float32)],
        ),
        compiler_params=pltpu.CompilerParams(
            dimension_semantics=("parallel", "arbitrary"),
            vmem_limit_bytes=_VMEM_LIMIT),
        cost_estimate=pl.CostEstimate(
            flops=4 * rows_p * d_model * d_ff_p,
            transcendentals=0,
            bytes_accessed=(2 * rows_p * d_model + 2 * d_model * d_ff_p
                            + d_ff_p + d_model) * isz),
    )(xp, w1, b1.reshape(1, d_ff_p), w2, b2.reshape(1, d_model))
    return out[:rows]


# ------------------------------------------------------------ encoder layer --
@functools.partial(jax.jit, static_argnames=("n_head",))
def encoder_layer(x, seq_lens, params, *, n_head):
    B, S, d = x.shape
    dk = d // n_head
    x2d = x.reshape(B * S, d)

    # ---- multi-head self attention ----
    wqkv = jnp.concatenate([params["wq"], params["wk"], params["wv"]], axis=1)
    bqkv = jnp.concatenate([params["bq"], params["bk"], params["bv"]], axis=0)
    qkv = linear(x2d, wqkv, bqkv)                          # (B*S, 3d)
    q, k, v = jnp.split(qkv, 3, axis=1)

    def heads(t):                                          # (B*S, d) -> (B*H, S, dk)
        return t.reshape(B, S, n_head, dk).transpose(0, 2, 1, 3).reshape(B * n_head, S, dk)

    klens = jnp.repeat(seq_lens.astype(jnp.int32), n_head)
    ctx = attention(heads(q), heads(k), heads(v), klens)   # (B*H, S, dk)
    ctx = ctx.reshape(B, n_head, S, dk).transpose(0, 2, 1, 3).reshape(B * S, d)
    attn_out = linear(ctx, params["wo"], params["bo"])

    # ---- residual + LN, FFN, residual + LN ----
    h1 = add_layer_norm(attn_out, x2d, params["ln0_g"], params["ln0_b"])
    ff = positionwise_ffn(h1, params["w1"], params["b1"], params["w2"], params["b2"])
    out = add_layer_norm(ff, h1, params["ln1_g"], params["ln1_b"])
    return out.reshape(B, S, d)


# -------------------------------------------------------- pure-JAX reference --
def ref_encoder_layer(x, seq_lens, params, n_head):
    B, S, d = x.shape
    dk = d // n_head

    def lin(t, w, b):
        return t @ w + b

    def heads(t):
        return t.reshape(B, S, n_head, dk).transpose(0, 2, 1, 3)   # (B,H,S,dk)

    qh = heads(lin(x, params["wq"], params["bq"]))
    kh = heads(lin(x, params["wk"], params["bk"]))
    vh = heads(lin(x, params["wv"], params["bv"]))
    s = jnp.einsum("bhqd,bhkd->bhqk", qh, kh) * (1.0 / dk ** 0.5)
    key_ids = jnp.arange(S)[None, None, None, :]
    mask = key_ids < seq_lens[:, None, None, None]
    s = jnp.where(mask, s, -1e30)
    p = jax.nn.softmax(s, axis=-1)
    ctx = jnp.einsum("bhqk,bhkd->bhqd", p, vh).transpose(0, 2, 1, 3).reshape(B, S, d)
    attn_out = lin(ctx, params["wo"], params["bo"])

    def ln(t, g, bta):
        mu = t.mean(-1, keepdims=True)
        var = ((t - mu) ** 2).mean(-1, keepdims=True)
        return (t - mu) * jax.lax.rsqrt(var + _LN_EPS) * g + bta

    h1 = ln(attn_out + x, params["ln0_g"], params["ln0_b"])
    ff = lin(jnp.maximum(lin(h1, params["w1"], params["b1"]), 0.0),
             params["w2"], params["b2"])
    return ln(ff + h1, params["ln1_g"], params["ln1_b"])


if __name__ == "__main__":
    batch, seq, d_model, n_head = 2, 8, 32, 4
    d_ff = 4 * d_model

    key = jax.random.PRNGKey(0)
    ks = jax.random.split(key, 18)

    x = jax.random.normal(ks[0], (batch, seq, d_model), dtype=jnp.float32)
    seq_lens = jnp.array([seq, seq - 3], dtype=jnp.int32)

    def rnd(k, shape, scale):
        return jax.random.normal(k, shape, dtype=jnp.float32) * scale

    sd = 1.0 / d_model ** 0.5
    # (PyTorch inits LayerNorm to gamma=1, beta=0; small random affine here to
    #  exercise that code path in the correctness check.)
    params = dict(
        wq=rnd(ks[1], (d_model, d_model), sd), bq=rnd(ks[2], (d_model,), 0.01),
        wk=rnd(ks[3], (d_model, d_model), sd), bk=rnd(ks[4], (d_model,), 0.01),
        wv=rnd(ks[5], (d_model, d_model), sd), bv=rnd(ks[6], (d_model,), 0.01),
        wo=rnd(ks[7], (d_model, d_model), sd), bo=rnd(ks[8], (d_model,), 0.01),
        w1=rnd(ks[9], (d_model, d_ff), sd), b1=rnd(ks[10], (d_ff,), 0.01),
        w2=rnd(ks[11], (d_ff, d_model), 1.0 / d_ff ** 0.5), b2=rnd(ks[12], (d_model,), 0.01),
        ln0_g=1.0 + rnd(ks[13], (d_model,), 0.1), ln0_b=rnd(ks[14], (d_model,), 0.1),
        ln1_g=1.0 + rnd(ks[15], (d_model,), 0.1), ln1_b=rnd(ks[16], (d_model,), 0.1),
    )

    out = encoder_layer(x, seq_lens, params, n_head=n_head)
    out = jax.block_until_ready(out)

    ref = ref_encoder_layer(x, seq_lens, params, n_head)
    assert out.shape == (batch, seq, d_model)
    assert jnp.allclose(out, ref, atol=2e-3, rtol=2e-3), \
        f"mismatch vs reference, max abs err {jnp.max(jnp.abs(out - ref))}"

    print("KERNEL_OK")
</pallas_src>

<mosaic_0001>
module attributes {stable_mosaic.version = 11 : i64} {
  func.func @_linear_kernel(%arg0: i32, %arg1: memref<16x32xf32, #tpu.memory_space<vmem>>, %arg2: memref<32x96xf32, #tpu.memory_space<vmem>>, %arg3: memref<1x96xf32, #tpu.memory_space<vmem>>, %arg4: memref<16x96xf32, #tpu.memory_space<vmem>>) attributes {dimension_semantics = [#tpu.dimension_semantics<parallel>], iteration_bounds = array<i64: 1>, scalar_prefetch = 0 : i64, scratch_operands = 0 : i64, tpu.core_type = #tpu.core_type<tc>, window_params = [{transform_indices = @transform_0, window_bounds = array<i64: 16, 32>}, {pipeline_mode = #tpu.pipeline_mode<synchronous>, transform_indices = @transform_1, window_bounds = array<i64: 32, 96>}, {pipeline_mode = #tpu.pipeline_mode<synchronous>, transform_indices = @transform_2, window_bounds = array<i64: 1, 96>}, {transform_indices = @transform_3, window_bounds = array<i64: 16, 96>}]} {
    %c0 = arith.constant 0 : index
    %c0_0 = arith.constant 0 : index
    %0 = vector.load %arg1[%c0, %c0_0] : memref<16x32xf32, #tpu.memory_space<vmem>>, vector<16x32xf32>
    %c0_1 = arith.constant 0 : index
    %c0_2 = arith.constant 0 : index
    %1 = vector.load %arg2[%c0_1, %c0_2] : memref<32x96xf32, #tpu.memory_space<vmem>>, vector<32x96xf32>
    %cst = arith.constant dense<0.000000e+00> : vector<16x96xf32>
    %2 = tpu.matmul %0, %1, %cst {dimension_numbers = #tpu.dot_dimension_numbers<[1], [0], [0], [1], [0, 0, 1, 1], [], []>} : vector<16x32xf32>, vector<32x96xf32>, vector<16x96xf32> -> vector<16x96xf32>
    %c0_3 = arith.constant 0 : index
    %c0_4 = arith.constant 0 : index
    %3 = vector.load %arg3[%c0_3, %c0_4] : memref<1x96xf32, #tpu.memory_space<vmem>>, vector<1x96xf32>
    %4 = vector.broadcast %3 : vector<1x96xf32> to vector<16x96xf32>
    %5 = arith.addf %2, %4 : vector<16x96xf32>
    %c0_5 = arith.constant 0 : index
    %c0_6 = arith.constant 0 : index
    %6 = vector.load %arg4[%c0_5, %c0_6] : memref<16x96xf32, #tpu.memory_space<vmem>>, vector<16x96xf32>
    tpu.vector_store %arg4[%c0_5, %c0_6], %5 {strides = array<i32>} : memref<16x96xf32, #tpu.memory_space<vmem>>, vector<16x96xf32>,
    return
  }
  func.func @transform_0(%arg0: i32) -> (i32, i32) {
    %c0_i32 = arith.constant 0 : i32
    %c0_i32_0 = arith.constant 0 : i32
    return %arg0, %c0_i32 : i32, i32
  }
  func.func @transform_1(%arg0: i32) -> (i32, i32) {
    %c0_i32 = arith.constant 0 : i32
    %c0_i32_0 = arith.constant 0 : i32
    %c0_i32_1 = arith.constant 0 : i32
    return %c0_i32, %c0_i32_0 : i32, i32
  }
  func.func @transform_2(%arg0: i32) -> (i32, i32) {
    %c0_i32 = arith.constant 0 : i32
    %c0_i32_0 = arith.constant 0 : i32
    %c0_i32_1 = arith.constant 0 : i32
    return %c0_i32, %c0_i32_0 : i32, i32
  }
  func.func @transform_3(%arg0: i32) -> (i32, i32) {
    %c0_i32 = arith.constant 0 : i32
    %c0_i32_0 = arith.constant 0 : i32
    return %arg0, %c0_i32 : i32, i32
  }
}

module attributes {stable_mosaic.version = 11 : i64} {
  func.func @_attn_kernel(%arg0: i32, %arg1: memref<8xi32, #tpu.memory_space<smem>>, %arg2: memref<1x8x8xf32, #tpu.memory_space<vmem>>, %arg3: memref<1x8x8xf32, #tpu.memory_space<vmem>>, %arg4: memref<1x8x8xf32, #tpu.memory_space<vmem>>, %arg5: memref<1x8x8xf32, #tpu.memory_space<vmem>>) attributes {dimension_semantics = [#tpu.dimension_semantics<parallel>], iteration_bounds = array<i64: 8>, scalar_prefetch = 1 : i64, scratch_operands = 0 : i64, tpu.core_type = #tpu.core_type<tc>, window_params = [{transform_indices = @transform_0, window_bounds = array<i64: 1, 8, 8>}, {transform_indices = @transform_1, window_bounds = array<i64: 1, 8, 8>}, {transform_indices = @transform_2, window_bounds = array<i64: 1, 8, 8>}, {transform_indices = @transform_3, window_bounds = array<i64: 1, 8, 8>}]} {
    %c0 = arith.constant 0 : index
    %c0_0 = arith.constant 0 : index
    %c0_1 = arith.constant 0 : index
    %0 = vector.load %arg2[%c0, %c0_0, %c0_1] : memref<1x8x8xf32, #tpu.memory_space<vmem>>, vector<1x8x8xf32>
    %1 = vector.shape_cast %0 : vector<1x8x8xf32> to vector<8x8xf32>
    %c0_2 = arith.constant 0 : index
    %c0_3 = arith.constant 0 : index
    %c0_4 = arith.constant 0 : index
    %2 = vector.load %arg3[%c0_2, %c0_3, %c0_4] : memref<1x8x8xf32, #tpu.memory_space<vmem>>, vector<1x8x8xf32>
    %3 = vector.shape_cast %2 : vector<1x8x8xf32> to vector<8x8xf32>
    %c0_5 = arith.constant 0 : index
    %c0_6 = arith.constant 0 : index
    %c0_7 = arith.constant 0 : index
    %4 = vector.load %arg4[%c0_5, %c0_6, %c0_7] : memref<1x8x8xf32, #tpu.memory_space<vmem>>, vector<1x8x8xf32>
    %5 = vector.shape_cast %4 : vector<1x8x8xf32> to vector<8x8xf32>
    %6 = tpu.transpose %3, [1, 0] : vector<8x8xf32> -> vector<8x8xf32>
    %cst = arith.constant dense<0.000000e+00> : vector<8x8xf32>
    %7 = tpu.matmul %1, %6, %cst {dimension_numbers = #tpu.dot_dimension_numbers<[1], [0], [0], [1], [0, 0, 1, 1], [], []>} : vector<8x8xf32>, vector<8x8xf32>, vector<8x8xf32> -> vector<8x8xf32>
    %cst_8 = arith.constant 0.353553385 : f32
    %8 = vector.broadcast %cst_8 : f32 to vector<8x8xf32>
    %9 = arith.mulf %7, %8 : vector<8x8xf32>
    %10 = tpu.iota {dimensions = array<i32: 1>} : vector<8x8xi32>
    %11 = arith.index_cast %arg0 : i32 to index
    %12 = memref.load %arg1[%11] : memref<8xi32, #tpu.memory_space<smem>>
    %13 = vector.broadcast %12 : i32 to vector<8x8xi32>
    %14 = arith.cmpi slt, %10, %13 : vector<8x8xi32>
    %cst_9 = arith.constant -1.000000e+30 : f32
    %15 = vector.broadcast %cst_9 : f32 to vector<8x8xf32>
    %16 = arith.select %14, %9, %15 : vector<8x8xi1>, vector<8x8xf32>
    %cst_10 = arith.constant dense<0xFF800000> : vector<8xf32>
    %17 = vector.multi_reduction <maximumf>, %16, %cst_10 [1] : vector<8x8xf32> to vector<8xf32>
    %18 = vector.shape_cast %17 : vector<8xf32> to vector<8x1xf32>
    %19 = vector.broadcast %18 : vector<8x1xf32> to vector<8x8xf32>
    %20 = arith.subf %16, %19 : vector<8x8xf32>
    %21 = math.exp %20 : vector<8x8xf32>
    %cst_11 = arith.constant dense<0.000000e+00> : vector<8xf32>
    %22 = vector.multi_reduction <add>, %21, %cst_11 [1] : vector<8x8xf32> to vector<8xf32>
    %23 = vector.shape_cast %22 : vector<8xf32> to vector<8x1xf32>
    %24 = tpu.reciprocal %23 : vector<8x1xf32> -> vector<8x1xf32>
    %25 = vector.broadcast %24 : vector<8x1xf32> to vector<8x8xf32>
    %26 = arith.mulf %21, %25 : vector<8x8xf32>
    %cst_12 = arith.constant dense<0.000000e+00> : vector<8x8xf32>
    %27 = tpu.matmul %26, %5, %cst_12 {dimension_numbers = #tpu.dot_dimension_numbers<[1], [0], [0], [1], [0, 0, 1, 1], [], []>} : vector<8x8xf32>, vector<8x8xf32>, vector<8x8xf32> -> vector<8x8xf32>
    %c0_13 = arith.constant 0 : index
    %c0_14 = arith.constant 0 : index
    %c0_15 = arith.constant 0 : index
    %28 = vector.load %arg5[%c0_13, %c0_14, %c0_15] : memref<1x8x8xf32, #tpu.memory_space<vmem>>, vector<1x8x8xf32>
    %29 = vector.shape_cast %28 : vector<1x8x8xf32> to vector<8x8xf32>
    %30 = vector.shape_cast %27 : vector<8x8xf32> to vector<1x8x8xf32>
    tpu.vector_store %arg5[%c0_13, %c0_14, %c0_15], %30 {strides = array<i32>} : memref<1x8x8xf32, #tpu.memory_space<vmem>>, vector<1x8x8xf32>,
    return
  }
  func.func @transform_0(%arg0: i32, %arg1: memref<8xi32, #tpu.memory_space<smem>>) -> (i32, i32, i32) {
    %c0_i32 = arith.constant 0 : i32
    %c0_i32_0 = arith.constant 0 : i32
    %c0_i32_1 = arith.constant 0 : i32
    return %arg0, %c0_i32, %c0_i32_0 : i32, i32, i32
  }
  func.func @transform_1(%arg0: i32, %arg1: memref<8xi32, #tpu.memory_space<smem>>) -> (i32, i32, i32) {
    %c0_i32 = arith.constant 0 : i32
    %c0_i32_0 = arith.constant 0 : i32
    %c0_i32_1 = arith.constant 0 : i32
    return %arg0, %c0_i32, %c0_i32_0 : i32, i32, i32
  }
  func.func @transform_2(%arg0: i32, %arg1: memref<8xi32, #tpu.memory_space<smem>>) -> (i32, i32, i32) {
    %c0_i32 = arith.constant 0 : i32
    %c0_i32_0 = arith.constant 0 : i32
    %c0_i32_1 = arith.constant 0 : i32
    return %arg0, %c0_i32, %c0_i32_0 : i32, i32, i32
  }
  func.func @transform_3(%arg0: i32, %arg1: memref<8xi32, #tpu.memory_space<smem>>) -> (i32, i32, i32) {
    %c0_i32 = arith.constant 0 : i32
    %c0_i32_0 = arith.constant 0 : i32
    %c0_i32_1 = arith.constant 0 : i32
    return %arg0, %c0_i32, %c0_i32_0 : i32, i32, i32
  }
}

module attributes {stable_mosaic.version = 11 : i64} {
  func.func @_linear_kernel(%arg0: i32, %arg1: memref<16x32xf32, #tpu.memory_space<vmem>>, %arg2: memref<32x32xf32, #tpu.memory_space<vmem>>, %arg3: memref<1x32xf32, #tpu.memory_space<vmem>>, %arg4: memref<16x32xf32, #tpu.memory_space<vmem>>) attributes {dimension_semantics = [#tpu.dimension_semantics<parallel>], iteration_bounds = array<i64: 1>, scalar_prefetch = 0 : i64, scratch_operands = 0 : i64, tpu.core_type = #tpu.core_type<tc>, window_params = [{transform_indices = @transform_0, window_bounds = array<i64: 16, 32>}, {pipeline_mode = #tpu.pipeline_mode<synchronous>, transform_indices = @transform_1, window_bounds = array<i64: 32, 32>}, {pipeline_mode = #tpu.pipeline_mode<synchronous>, transform_indices = @transform_2, window_bounds = array<i64: 1, 32>}, {transform_indices = @transform_3, window_bounds = array<i64: 16, 32>}]} {
    %c0 = arith.constant 0 : index
    %c0_0 = arith.constant 0 : index
    %0 = vector.load %arg1[%c0, %c0_0] : memref<16x32xf32, #tpu.memory_space<vmem>>, vector<16x32xf32>
    %c0_1 = arith.constant 0 : index
    %c0_2 = arith.constant 0 : index
    %1 = vector.load %arg2[%c0_1, %c0_2] : memref<32x32xf32, #tpu.memory_space<vmem>>, vector<32x32xf32>
    %cst = arith.constant dense<0.000000e+00> : vector<16x32xf32>
    %2 = tpu.matmul %0, %1, %cst {dimension_numbers = #tpu.dot_dimension_numbers<[1], [0], [0], [1], [0, 0, 1, 1], [], []>} : vector<16x32xf32>, vector<32x32xf32>, vector<16x32xf32> -> vector<16x32xf32>
    %c0_3 = arith.constant 0 : index
    %c0_4 = arith.constant 0 : index
    %3 = vector.load %arg3[%c0_3, %c0_4] : memref<1x32xf32, #tpu.memory_space<vmem>>, vector<1x32xf32>
    %4 = vector.broadcast %3 : vector<1x32xf32> to vector<16x32xf32>
    %5 = arith.addf %2, %4 : vector<16x32xf32>
    %c0_5 = arith.constant 0 : index
    %c0_6 = arith.constant 0 : index
    %6 = vector.load %arg4[%c0_5, %c0_6] : memref<16x32xf32, #tpu.memory_space<vmem>>, vector<16x32xf32>
    tpu.vector_store %arg4[%c0_5, %c0_6], %5 {strides = array<i32>} : memref<16x32xf32, #tpu.memory_space<vmem>>, vector<16x32xf32>,
    return
  }
  func.func @transform_0(%arg0: i32) -> (i32, i32) {
    %c0_i32 = arith.constant 0 : i32
    %c0_i32_0 = arith.constant 0 : i32
    return %arg0, %c0_i32 : i32, i32
  }
  func.func @transform_1(%arg0: i32) -> (i32, i32) {
    %c0_i32 = arith.constant 0 : i32
    %c0_i32_0 = arith.constant 0 : i32
    %c0_i32_1 = arith.constant 0 : i32
    return %c0_i32, %c0_i32_0 : i32, i32
  }
  func.func @transform_2(%arg0: i32) -> (i32, i32) {
    %c0_i32 = arith.constant 0 : i32
    %c0_i32_0 = arith.constant 0 : i32
    %c0_i32_1 = arith.constant 0 : i32
    return %c0_i32, %c0_i32_0 : i32, i32
  }
  func.func @transform_3(%arg0: i32) -> (i32, i32) {
    %c0_i32 = arith.constant 0 : i32
    %c0_i32_0 = arith.constant 0 : i32
    return %arg0, %c0_i32 : i32, i32
  }
}

module attributes {stable_mosaic.version = 11 : i64} {
  func.func @_add_ln_kernel(%arg0: i32, %arg1: memref<16x32xf32, #tpu.memory_space<vmem>>, %arg2: memref<16x32xf32, #tpu.memory_space<vmem>>, %arg3: memref<1x32xf32, #tpu.memory_space<vmem>>, %arg4: memref<1x32xf32, #tpu.memory_space<vmem>>, %arg5: memref<16x32xf32, #tpu.memory_space<vmem>>) attributes {dimension_semantics = [#tpu.dimension_semantics<parallel>], iteration_bounds = array<i64: 1>, scalar_prefetch = 0 : i64, scratch_operands = 0 : i64, tpu.core_type = #tpu.core_type<tc>, window_params = [{transform_indices = @transform_0, window_bounds = array<i64: 16, 32>}, {transform_indices = @transform_1, window_bounds = array<i64: 16, 32>}, {pipeline_mode = #tpu.pipeline_mode<synchronous>, transform_indices = @transform_2, window_bounds = array<i64: 1, 32>}, {pipeline_mode = #tpu.pipeline_mode<synchronous>, transform_indices = @transform_3, window_bounds = array<i64: 1, 32>}, {transform_indices = @transform_4, window_bounds = array<i64: 16, 32>}]} {
    %c0 = arith.constant 0 : index
    %c0_0 = arith.constant 0 : index
    %0 = vector.load %arg1[%c0, %c0_0] : memref<16x32xf32, #tpu.memory_space<vmem>>, vector<16x32xf32>
    %c0_1 = arith.constant 0 : index
    %c0_2 = arith.constant 0 : index
    %1 = vector.load %arg2[%c0_1, %c0_2] : memref<16x32xf32, #tpu.memory_space<vmem>>, vector<16x32xf32>
    %2 = arith.addf %0, %1 : vector<16x32xf32>
    %cst = arith.constant dense<0.000000e+00> : vector<16xf32>
    %3 = vector.multi_reduction <add>, %2, %cst [1] : vector<16x32xf32> to vector<16xf32>
    %4 = vector.shape_cast %3 : vector<16xf32> to vector<16x1xf32>
    %cst_3 = arith.constant 3.200000e+01 : f32
    %5 = vector.broadcast %cst_3 : f32 to vector<16x1xf32>
    %6 = arith.divf %4, %5 : vector<16x1xf32>
    %7 = vector.broadcast %6 : vector<16x1xf32> to vector<16x32xf32>
    %8 = arith.subf %2, %7 : vector<16x32xf32>
    %9 = arith.mulf %8, %8 : vector<16x32xf32>
    %cst_4 = arith.constant dense<0.000000e+00> : vector<16xf32>
    %10 = vector.multi_reduction <add>, %9, %cst_4 [1] : vector<16x32xf32> to vector<16xf32>
    %11 = vector.shape_cast %10 : vector<16xf32> to vector<16x1xf32>
    %cst_5 = arith.constant 3.200000e+01 : f32
    %12 = vector.broadcast %cst_5 : f32 to vector<16x1xf32>
    %13 = arith.divf %11, %12 : vector<16x1xf32>
    %cst_6 = arith.constant 9.99999974E-6 : f32
    %14 = vector.broadcast %cst_6 : f32 to vector<16x1xf32>
    %15 = arith.addf %13, %14 : vector<16x1xf32>
    %16 = math.rsqrt %15 : vector<16x1xf32>
    %17 = vector.broadcast %16 : vector<16x1xf32> to vector<16x32xf32>
    %18 = arith.mulf %8, %17 : vector<16x32xf32>
    %c0_7 = arith.constant 0 : index
    %c0_8 = arith.constant 0 : index
    %19 = vector.load %arg3[%c0_7, %c0_8] : memref<1x32xf32, #tpu.memory_space<vmem>>, vector<1x32xf32>
    %20 = vector.broadcast %19 : vector<1x32xf32> to vector<16x32xf32>
    %21 = arith.mulf %18, %20 : vector<16x32xf32>
    %c0_9 = arith.constant 0 : index
    %c0_10 = arith.constant 0 : index
    %22 = vector.load %arg4[%c0_9, %c0_10] : memref<1x32xf32, #tpu.memory_space<vmem>>, vector<1x32xf32>
    %23 = vector.broadcast %22 : vector<1x32xf32> to vector<16x32xf32>
    %24 = arith.addf %21, %23 : vector<16x32xf32>
    %c0_11 = arith.constant 0 : index
    %c0_12 = arith.constant 0 : index
    %25 = vector.load %arg5[%c0_11, %c0_12] : memref<16x32xf32, #tpu.memory_space<vmem>>, vector<16x32xf32>
    tpu.vector_store %arg5[%c0_11, %c0_12], %24 {strides = array<i32>} : memref<16x32xf32, #tpu.memory_space<vmem>>, vector<16x32xf32>,
    return
  }
  func.func @transform_0(%arg0: i32) -> (i32, i32) {
    %c0_i32 = arith.constant 0 : i32
    %c0_i32_0 = arith.constant 0 : i32
    return %arg0, %c0_i32 : i32, i32
  }
  func.func @transform_1(%arg0: i32) -> (i32, i32) {
    %c0_i32 = arith.constant 0 : i32
    %c0_i32_0 = arith.constant 0 : i32
    return %arg0, %c0_i32 : i32, i32
  }
  func.func @transform_2(%arg0: i32) -> (i32, i32) {
    %c0_i32 = arith.constant 0 : i32
    %c0_i32_0 = arith.constant 0 : i32
    %c0_i32_1 = arith.constant 0 : i32
    return %c0_i32, %c0_i32_0 : i32, i32
  }
  func.func @transform_3(%arg0: i32) -> (i32, i32) {
    %c0_i32 = arith.constant 0 : i32
    %c0_i32_0 = arith.constant 0 : i32
    %c0_i32_1 = arith.constant 0 : i32
    return %c0_i32, %c0_i32_0 : i32, i32
  }
  func.func @transform_4(%arg0: i32) -> (i32, i32) {
    %c0_i32 = arith.constant 0 : i32
    %c0_i32_0 = arith.constant 0 : i32
    return %arg0, %c0_i32 : i32, i32
  }
}

module attributes {stable_mosaic.version = 11 : i64} {
  func.func @_ffn_kernel(%arg0: i32, %arg1: i32, %arg2: memref<16x32xf32, #tpu.memory_space<vmem>>, %arg3: memref<32x128xf32, #tpu.memory_space<vmem>>, %arg4: memref<1x128xf32, #tpu.memory_space<vmem>>, %arg5: memref<128x32xf32, #tpu.memory_space<vmem>>, %arg6: memref<1x32xf32, #tpu.memory_space<vmem>>, %arg7: memref<16x32xf32, #tpu.memory_space<vmem>>, %arg8: memref<16x32xf32, #tpu.memory_space<vmem>>) attributes {dimension_semantics = [#tpu.dimension_semantics<parallel>, #tpu.dimension_semantics<arbitrary>], iteration_bounds = array<i64: 1, 1>, scalar_prefetch = 0 : i64, scratch_operands = 1 : i64, tpu.core_type = #tpu.core_type<tc>, window_params = [{transform_indices = @transform_0, window_bounds = array<i64: 16, 32>}, {transform_indices = @transform_1, window_bounds = array<i64: 32, 128>}, {transform_indices = @transform_2, window_bounds = array<i64: 1, 128>}, {transform_indices = @transform_3, window_bounds = array<i64: 128, 32>}, {pipeline_mode = #tpu.pipeline_mode<synchronous>, transform_indices = @transform_4, window_bounds = array<i64: 1, 32>}, {transform_indices = @transform_5, window_bounds = array<i64: 16, 32>}]} {
    %c0_i32 = arith.constant 0 : i32
    %0 = arith.cmpi eq, %arg1, %c0_i32 : i32
    %1 = arith.extui %0 : i1 to i32
    %c0_i32_0 = arith.constant 0 : i32
    %2 = arith.cmpi ne, %1, %c0_i32_0 : i32
    scf.if %2 {
      %cst_16 = arith.constant 0.000000e+00 : f32
      %19 = vector.broadcast %cst_16 : f32 to vector<16x32xf32>
      %c0_17 = arith.constant 0 : index
      %c0_18 = arith.constant 0 : index
      %20 = vector.load %arg8[%c0_17, %c0_18] : memref<16x32xf32, #tpu.memory_space<vmem>>, vector<16x32xf32>
      tpu.vector_store %arg8[%c0_17, %c0_18], %19 {strides = array<i32>} : memref<16x32xf32, #tpu.memory_space<vmem>>, vector<16x32xf32>,
    } else {
    }
    %c0 = arith.constant 0 : index
    %c0_1 = arith.constant 0 : index
    %3 = vector.load %arg2[%c0, %c0_1] : memref<16x32xf32, #tpu.memory_space<vmem>>, vector<16x32xf32>
    %c0_2 = arith.constant 0 : index
    %c0_3 = arith.constant 0 : index
    %4 = vector.load %arg3[%c0_2, %c0_3] : memref<32x128xf32, #tpu.memory_space<vmem>>, vector<32x128xf32>
    %cst = arith.constant dense<0.000000e+00> : vector<16x128xf32>
    %5 = tpu.matmul %3, %4, %cst {dimension_numbers = #tpu.dot_dimension_numbers<[1], [0], [0], [1], [0, 0, 1, 1], [], []>} : vector<16x32xf32>, vector<32x128xf32>, vector<16x128xf32> -> vector<16x128xf32>
    %c0_4 = arith.constant 0 : index
    %c0_5 = arith.constant 0 : index
    %6 = vector.load %arg4[%c0_4, %c0_5] : memref<1x128xf32, #tpu.memory_space<vmem>>, vector<1x128xf32>
    %7 = vector.broadcast %6 : vector<1x128xf32> to vector<16x128xf32>
    %8 = arith.addf %5, %7 : vector<16x128xf32>
    %cst_6 = arith.constant 0.000000e+00 : f32
    %9 = vector.broadcast %cst_6 : f32 to vector<16x128xf32>
    %10 = arith.maximumf %8, %9 : vector<16x128xf32>
    %c0_7 = arith.constant 0 : index
    %c0_8 = arith.constant 0 : index
    %11 = vector.load %arg8[%c0_7, %c0_8] : memref<16x32xf32, #tpu.memory_space<vmem>>, vector<16x32xf32>
    %c0_9 = arith.constant 0 : index
    %c0_10 = arith.constant 0 : index
    %12 = vector.load %arg5[%c0_9, %c0_10] : memref<128x32xf32, #tpu.memory_space<vmem>>, vector<128x32xf32>
    %cst_11 = arith.constant dense<0.000000e+00> : vector<16x32xf32>
    %13 = tpu.matmul %10, %12, %cst_11 {dimension_numbers = #tpu.dot_dimension_numbers<[1], [0], [0], [1], [0, 0, 1, 1], [], []>} : vector<16x128xf32>, vector<128x32xf32>, vector<16x32xf32> -> vector<16x32xf32>
    %14 = arith.addf %11, %13 : vector<16x32xf32>
    %c0_12 = arith.constant 0 : index
    %c0_13 = arith.constant 0 : index
    %15 = vector.load %arg8[%c0_12, %c0_13] : memref<16x32xf32, #tpu.memory_space<vmem>>, vector<16x32xf32>
    tpu.vector_store %arg8[%c0_12, %c0_13], %14 {strides = array<i32>} : memref<16x32xf32, #tpu.memory_space<vmem>>, vector<16x32xf32>,
    %c0_i32_14 = arith.constant 0 : i32
    %16 = arith.cmpi eq, %arg1, %c0_i32_14 : i32
    %17 = arith.extui %16 : i1 to i32
    %c0_i32_15 = arith.constant 0 : i32
    %18 = arith.cmpi ne, %17, %c0_i32_15 : i32
    scf.if %18 {
      %c0_16 = arith.constant 0 : index
      %c0_17 = arith.constant 0 : index
      %19 = vector.load %arg8[%c0_16, %c0_17] : memref<16x32xf32, #tpu.memory_space<vmem>>, vector<16x32xf32>
      %c0_18 = arith.constant 0 : index
      %c0_19 = arith.constant 0 : index
      %20 = vector.load %arg6[%c0_18, %c0_19] : memref<1x32xf32, #tpu.memory_space<vmem>>, vector<1x32xf32>
      %21 = vector.broadcast %20 : vector<1x32xf32> to vector<16x32xf32>
      %22 = arith.addf %19, %21 : vector<16x32xf32>
      %c0_20 = arith.constant 0 : index
      %c0_21 = arith.constant 0 : index
      %23 = vector.load %arg7[%c0_20, %c0_21] : memref<16x32xf32, #tpu.memory_space<vmem>>, vector<16x32xf32>
      tpu.vector_store %arg7[%c0_20, %c0_21], %22 {strides = array<i32>} : memref<16x32xf32, #tpu.memory_space<vmem>>, vector<16x32xf32>,
    } else {
    }
    return
  }
  func.func @transform_0(%arg0: i32, %arg1: i32) -> (i32, i32) {
    %c0_i32 = arith.constant 0 : i32
    %c0_i32_0 = arith.constant 0 : i32
    return %arg0, %c0_i32 : i32, i32
  }
  func.func @transform_1(%arg0: i32, %arg1: i32) -> (i32, i32) {
    %c0_i32 = arith.constant 0 : i32
    %c0_i32_0 = arith.constant 0 : i32
    return %c0_i32, %arg1 : i32, i32
  }
  func.func @transform_2(%arg0: i32, %arg1: i32) -> (i32, i32) {
    %c0_i32 = arith.constant 0 : i32
    %c0_i32_0 = arith.constant 0 : i32
    return %c0_i32, %arg1 : i32, i32
  }
  func.func @transform_3(%arg0: i32, %arg1: i32) -> (i32, i32) {
    %c0_i32 = arith.constant 0 : i32
    %c0_i32_0 = arith.constant 0 : i32
    return %arg1, %c0_i32 : i32, i32
  }
  func.func @transform_4(%arg0: i32, %arg1: i32) -> (i32, i32) {
    %c0_i32 = arith.constant 0 : i32
    %c0_i32_0 = arith.constant 0 : i32
    %c0_i32_1 = arith.constant 0 : i32
    return %c0_i32, %c0_i32_0 : i32, i32
  }
  func.func @transform_5(%arg0: i32, %arg1: i32) -> (i32, i32) {
    %c0_i32 = arith.constant 0 : i32
    %c0_i32_0 = arith.constant 0 : i32
    return %arg0, %c0_i32 : i32, i32
  }
}

module attributes {stable_mosaic.version = 11 : i64} {
  func.func @_add_ln_kernel(%arg0: i32, %arg1: memref<16x32xf32, #tpu.memory_space<vmem>>, %arg2: memref<16x32xf32, #tpu.memory_space<vmem>>, %arg3: memref<1x32xf32, #tpu.memory_space<vmem>>, %arg4: memref<1x32xf32, #tpu.memory_space<vmem>>, %arg5: memref<16x32xf32, #tpu.memory_space<vmem>>) attributes {dimension_semantics = [#tpu.dimension_semantics<parallel>], iteration_bounds = array<i64: 1>, scalar_prefetch = 0 : i64, scratch_operands = 0 : i64, tpu.core_type = #tpu.core_type<tc>, window_params = [{transform_indices = @transform_0, window_bounds = array<i64: 16, 32>}, {transform_indices = @transform_1, window_bounds = array<i64: 16, 32>}, {pipeline_mode = #tpu.pipeline_mode<synchronous>, transform_indices = @transform_2, window_bounds = array<i64: 1, 32>}, {pipeline_mode = #tpu.pipeline_mode<synchronous>, transform_indices = @transform_3, window_bounds = array<i64: 1, 32>}, {transform_indices = @transform_4, window_bounds = array<i64: 16, 32>}]} {
    %c0 = arith.constant 0 : index
    %c0_0 = arith.constant 0 : index
    %0 = vector.load %arg1[%c0, %c0_0] : memref<16x32xf32, #tpu.memory_space<vmem>>, vector<16x32xf32>
    %c0_1 = arith.constant 0 : index
    %c0_2 = arith.constant 0 : index
    %1 = vector.load %arg2[%c0_1, %c0_2] : memref<16x32xf32, #tpu.memory_space<vmem>>, vector<16x32xf32>
    %2 = arith.addf %0, %1 : vector<16x32xf32>
    %cst = arith.constant dense<0.000000e+00> : vector<16xf32>
    %3 = vector.multi_reduction <add>, %2, %cst [1] : vector<16x32xf32> to vector<16xf32>
    %4 = vector.shape_cast %3 : vector<16xf32> to vector<16x1xf32>
    %cst_3 = arith.constant 3.200000e+01 : f32
    %5 = vector.broadcast %cst_3 : f32 to vector<16x1xf32>
    %6 = arith.divf %4, %5 : vector<16x1xf32>
    %7 = vector.broadcast %6 : vector<16x1xf32> to vector<16x32xf32>
    %8 = arith.subf %2, %7 : vector<16x32xf32>
    %9 = arith.mulf %8, %8 : vector<16x32xf32>
    %cst_4 = arith.constant dense<0.000000e+00> : vector<16xf32>
    %10 = vector.multi_reduction <add>, %9, %cst_4 [1] : vector<16x32xf32> to vector<16xf32>
    %11 = vector.shape_cast %10 : vector<16xf32> to vector<16x1xf32>
    %cst_5 = arith.constant 3.200000e+01 : f32
    %12 = vector.broadcast %cst_5 : f32 to vector<16x1xf32>
    %13 = arith.divf %11, %12 : vector<16x1xf32>
    %cst_6 = arith.constant 9.99999974E-6 : f32
    %14 = vector.broadcast %cst_6 : f32 to vector<16x1xf32>
    %15 = arith.addf %13, %14 : vector<16x1xf32>
    %16 = math.rsqrt %15 : vector<16x1xf32>
    %17 = vector.broadcast %16 : vector<16x1xf32> to vector<16x32xf32>
    %18 = arith.mulf %8, %17 : vector<16x32xf32>
    %c0_7 = arith.constant 0 : index
    %c0_8 = arith.constant 0 : index
    %19 = vector.load %arg3[%c0_7, %c0_8] : memref<1x32xf32, #tpu.memory_space<vmem>>, vector<1x32xf32>
    %20 = vector.broadcast %19 : vector<1x32xf32> to vector<16x32xf32>
    %21 = arith.mulf %18, %20 : vector<16x32xf32>
    %c0_9 = arith.constant 0 : index
    %c0_10 = arith.constant 0 : index
    %22 = vector.load %arg4[%c0_9, %c0_10] : memref<1x32xf32, #tpu.memory_space<vmem>>, vector<1x32xf32>
    %23 = vector.broadcast %22 : vector<1x32xf32> to vector<16x32xf32>
    %24 = arith.addf %21, %23 : vector<16x32xf32>
    %c0_11 = arith.constant 0 : index
    %c0_12 = arith.constant 0 : index
    %25 = vector.load %arg5[%c0_11, %c0_12] : memref<16x32xf32, #tpu.memory_space<vmem>>, vector<16x32xf32>
    tpu.vector_store %arg5[%c0_11, %c0_12], %24 {strides = array<i32>} : memref<16x32xf32, #tpu.memory_space<vmem>>, vector<16x32xf32>,
    return
  }
  func.func @transform_0(%arg0: i32) -> (i32, i32) {
    %c0_i32 = arith.constant 0 : i32
    %c0_i32_0 = arith.constant 0 : i32
    return %arg0, %c0_i32 : i32, i32
  }
  func.func @transform_1(%arg0: i32) -> (i32, i32) {
    %c0_i32 = arith.constant 0 : i32
    %c0_i32_0 = arith.constant 0 : i32
    return %arg0, %c0_i32 : i32, i32
  }
  func.func @transform_2(%arg0: i32) -> (i32, i32) {
    %c0_i32 = arith.constant 0 : i32
    %c0_i32_0 = arith.constant 0 : i32
    %c0_i32_1 = arith.constant 0 : i32
    return %c0_i32, %c0_i32_0 : i32, i32
  }
  func.func @transform_3(%arg0: i32) -> (i32, i32) {
    %c0_i32 = arith.constant 0 : i32
    %c0_i32_0 = arith.constant 0 : i32
    %c0_i32_1 = arith.constant 0 : i32
    return %c0_i32, %c0_i32_0 : i32, i32
  }
  func.func @transform_4(%arg0: i32) -> (i32, i32) {
    %c0_i32 = arith.constant 0 : i32
    %c0_i32_0 = arith.constant 0 : i32
    return %arg0, %c0_i32 : i32, i32
  }
}

</mosaic_0001>

<bundles_post_ra>
// kernel: encoder_layer.7
= control target key start
LH: loop header
LB: loop body
LE: loop exit
PB: predicated region body
PF: predicated region fallthrough
CT: control target
= control target key end

     0   :  { %s420_s18 = smov [#allocation3]   ;;  %s484_s0 = inlined_call_operand.vmem [shape: s32[8], index: 0, kind: input, shape index: {}]   ;;  %s485_s1 = inlined_call_operand.vmem [shape: f32[8,8,8], index: 1, kind: input, shape index: {}]   ;;  %s486_s2 = inlined_call_operand.vmem [shape: f32[8,8,8], index: 2, kind: input, shape index: {}]   ;;  %s487_s3 = inlined_call_operand.vmem [shape: f32[8,8,8], index: 3, kind: input, shape index: {}]   ;;  %s488_s4 = inlined_call_operand.vmem [shape: f32[8,8,8], index: 4, kind: output, shape index: {}]  }
   0x1   :  { %s10_s17 = sshll.u32 %s484_s0, 4  ;;  %s11_s17 = int_to_ptr.vmem [resolvable:$true] %s10_s17 }
   0x2   :  { %13 = dma.vmem_to_smem %s11_s17, 16, %s420_s18, [#allocation2] }
   0x3   :  { %414 = dma.done.wait [#allocation2], 16 }
   0x4   :  { %415 = vsyncadd [#allocation2], 4294967280 }
   0x5   :  { %16 = sfence }
   0x6   :  { %s449_s19 = smov 0  }
   0x7 LB: > { %s371_s20 = sadd.s32 4294967295, %s418_s19   ;;  %p375_p0 = scmp.ge.s32.totalorder %s418_s19, 1  ;;  %s418_s19 = sphi %s449_s19, %s22_s19  }
   0x8   : > { %p163_p1 = scmp.lt.s32.totalorder %s418_s19, 9 }
   0xa   : > { %p164_p2 = pnand %p375_p0, %p163_p1 }
   0xb   : > { %p193_p3 = scmp.lt.s32.totalorder (!%p164_p2), %s371_s20, 7  ;;  %s242_s28 = sld [smem:[#allocation3 + %s371_s20]] (!%p164_p2) }
   0xc   : > { %167 = sbr.rel (%p164_p2) target bundleno = 545 (0x221), region = 32 }
  0x11   : > { %s194_s0 = scalar_select %p193_p3, %s371_s20, 7  ;;  %vm212_vm0 = vcmask 64512   ;;  %v240_v2 = vlaneseq  ;;  %v243_v4 = vstv %s242_s28 }
  0x13   : > { %s457_s21 = sshll.u32 %s194_s0, 3  ;;  %v241_v3 = vand.u32 127, %v240_v2 }
  0x14   : > { %s200_s24 = scalar_lea.vmem %s486_s2, %s457_s21  ;;  %s196_s27 = scalar_lea.vmem %s485_s1, %s457_s21 }
  0x15   : > { %v210_v0 = vld [vmem:[%s200_s24] sm:$0xff]  ;;  %vm244_vm1 = vcmp.lt.s32.totalorder %v241_v3, %v243_v4  ;;  %s204_s5 = scalar_lea.vmem %s487_s3, %s457_s21  ;;  %s208_s8 = scalar_lea.vmem %s488_s4, %s457_s21 }
  0x16   : > { %380 = vmatpush.xpose.msk.msra.mxu0 %vm212_vm0, %v210_v0  ;;  %v209_v1 = vld [vmem:[%s196_s27] sm:$0xff] }
  0x17   : > { %v211_v14 = vld [vmem:[%s204_s5] sm:$0xff] }
  0x18   : > { %288 = vmatpush.msra.mxu1 %v211_v14 }
  0x19   : > { %381 = vmatmul.msk.f32.vlgmr.msra.gmra.mxu0 %vm212_vm0, %v209_v1 }
  0x96   : > { %v236_v5 = vpop.f32.mrf.mxu0 }
  0x97   : > { %v239_v6 = vmul.f32 0.35355338, %v236_v5 }
  0x99   : > { %v245_v7 = vsel %vm244_vm1, %v239_v6, -1e+30 }
  0x9a   : > { %v246_v8 = vsel %vm212_vm0, %v245_v7, -inf }
  0x9b   : > { %247 = vmax.xlane.f32.xlu0 %v246_v8 }
 0x10e   : > { %v248_v9 = vpop.xlane.xlu0 %247 }
 0x10f   : > { %v249_v10 = vsub.f32 %v245_v7, %v248_v9 }
 0x111   : > { %v250_v11 = vmul.f32 1.442695, %v249_v10 }
 0x113   : > { %394 = vpow2.f32 %v250_v11 }
 0x119   : > { %v395_v12 = vpop.eup %394 }
 0x11a   : > { %v252_v13 = vsel %vm212_vm0, %v395_v12, 0.0 }
 0x11b   : > { %253 = vadd.xlane.f32.xlu0 %v252_v13 }
 0x18e   : > { %v254_v15 = vpop.xlane.xlu0 %253 }
 0x18f   : > { %396 = vrcp.f32 %v254_v15  ;;  %v266_v19 = vand.u32 2147483648, %v254_v15  ;;  %v264_v21 = vand.u32 2147483647, %v254_v15  ;;  %vm260_vm3 = vweird.f32 %v254_v15 }
 0x191   : > { %v267_v23 = vor.u32 1.1754944e-38, %v266_v19  ;;  %vm265_vm5 = vcmp.eq.f32.partialorder %v264_v21, 8.507059e+37 }
 0x195   : > { %v397_v16 = vpop.eup %396 }
 0x196   : > { %v256_v17 = vmul.f32 %v397_v16, %v254_v15  ;;  %vm261_vm2 = vweird.f32 %v397_v16 }
 0x197   : > { %vm262_vm4 = vmor %vm260_vm3, %vm261_vm2 }
 0x198   : > { %v257_v18 = vsub.f32 1.0, %v256_v17 }
 0x19a   : > { %v258_v20 = vmul.f32 %v397_v16, %v257_v18 }
 0x19c   : > { %v259_v22 = vadd.f32 %v397_v16, %v258_v20 }
 0x19e   : > { %v263_v24 = vsel %vm262_vm4, %v397_v16, %v259_v22 }
 0x19f   : > { %v268_v25 = vsel %vm265_vm5, %v267_v23, %v263_v24 }
 0x1a0   : > { %v269_v26 = vmul.f32 %v395_v12, %v268_v25 }
 0x1a2   : > { %382 = vmatmul.msk.f32.vlgmr.msra.gmra.mxu1 %vm212_vm0, %v269_v26 }
 0x21f   : > { %v290_v27 = vpop.f32.mrf.mxu1 }
 0x220   : > { %293 = vst.msk [vmem:[%s208_s8] sm:$0xff] %vm212_vm0, %v290_v27 }
 0x221 PF: > { %s22_s19 = sadd.s32 1, %s418_s19  }
 0x222   : > { %p19_p4 = scmp.ge.s32.totalorder %s22_s19, 10  }
 0x224   :  { %21 = sbr.rel (!%p19_p4) target bundleno = 7 (0x7), region = 68 }

// kernel: encoder_layer.6
= control target key start
LH: loop header
LB: loop body
LE: loop exit
PB: predicated region body
PF: predicated region fallthrough
CT: control target
= control target key end

     0   :  { %vm24_vm0 = vcmask 261120   ;;  %vm54_vm1 = vcmask 785408   ;;  %s115_s1 = inlined_call_operand.vmem [shape: f32[32,96], index: 1, kind: input, shape index: {}]   ;;  %s116_s2 = inlined_call_operand.vmem [shape: f32[1,96], index: 2, kind: input, shape index: {}]   ;;  %s117_s0 = inlined_call_operand.vmem [shape: f32[16,32], index: 0, kind: input, shape index: {}]   ;;  %s118_s3 = inlined_call_operand.vmem [shape: f32[16,96], index: 3, kind: output, shape index: {}]  }
   0x1   :  { %v19_v0 = vld [vmem:[%s115_s1 + $0x18] sm:$0xff]  ;;  %v18_v1 = vld [vmem:[%s115_s1 + $0x10] sm:$0xff]  ;;  %v17_v2 = vld [vmem:[%s115_s1 + $0x8] sm:$0xff] }
   0x2   :  { %43 = vmatpush.msra.mxu0 %v19_v0  ;;  %63 = vmatpush.msra.mxu1 %v19_v0  ;;  %v16_v3 = vld [vmem:[%s115_s1] sm:$0xff]  ;;  %v15_v5 = vld [vmem:[%s117_s0 + $0x8] sm:$0xff] }
   0x3   :  { %v14_v4 = vld [vmem:[%s117_s0] sm:$0xff] }
   0x4   :  { %44 = vmatpush.msra.mxu0 %v18_v1  ;;  %64 = vmatpush.msra.mxu1 %v18_v1  ;;  %v67_v6 = vld [vmem:[%s116_s2] ss:$0 sm:$0xff] }
   0x6   :  { %45 = vmatpush.msra.mxu0 %v17_v2  ;;  %65 = vmatpush.msra.mxu1 %v17_v2 }
   0x8   :  { %46 = vmatpush.msra.mxu0 %v16_v3  ;;  %66 = vmatpush.msra.mxu1 %v16_v3 }
   0x9   :  { %61 = vmatmul.msk.f32.vlgmr.msra.gmra.mxu0 %vm24_vm0, %v14_v4  ;;  %62 = vmatmul.msk.f32.vlgmr.msra.gmra.mxu1 %vm24_vm0, %v15_v5 }
  0x86   :  { %v48_v7 = vpop.f32.mrf.mxu0  ;;  %v51_v8 = vpop.f32.mrf.mxu1 }
  0x87   :  { %v49_v9 = vadd.f32 %v67_v6, %v48_v7  ;;  %v52_v10 = vadd.f32 %v67_v6, %v51_v8 }
  0x89   :  { %55 = vst.msk [vmem:[%s118_s3] sm:$0xff] %vm54_vm1, %v49_v9 }
  0x8a   :  { %56 = vst.msk [vmem:[%s118_s3 + $0x8] sm:$0xff] %vm54_vm1, %v52_v10 }

// kernel: encoder_layer.8
= control target key start
LH: loop header
LB: loop body
LE: loop exit
PB: predicated region body
PF: predicated region fallthrough
CT: control target
= control target key end

     0   :  { %vm24_vm0 = vcmask 261120   ;;  %s114_s1 = inlined_call_operand.vmem [shape: f32[32,32], index: 1, kind: input, shape index: {}]   ;;  %s115_s2 = inlined_call_operand.vmem [shape: f32[1,32], index: 2, kind: input, shape index: {}]   ;;  %s116_s0 = inlined_call_operand.vmem [shape: f32[16,32], index: 0, kind: input, shape index: {}]   ;;  %s117_s3 = inlined_call_operand.vmem [shape: f32[16,32], index: 3, kind: output, shape index: {}]  }
   0x1   :  { %v19_v0 = vld [vmem:[%s114_s1 + $0x18] sm:$0xff]  ;;  %v18_v1 = vld [vmem:[%s114_s1 + $0x10] sm:$0xff]  ;;  %v17_v2 = vld [vmem:[%s114_s1 + $0x8] sm:$0xff] }
   0x2   :  { %43 = vmatpush.msra.mxu0 %v19_v0  ;;  %62 = vmatpush.msra.mxu1 %v19_v0  ;;  %v16_v3 = vld [vmem:[%s114_s1] sm:$0xff]  ;;  %v15_v5 = vld [vmem:[%s116_s0 + $0x8] sm:$0xff] }
   0x3   :  { %v14_v4 = vld [vmem:[%s116_s0] sm:$0xff] }
   0x4   :  { %44 = vmatpush.msra.mxu0 %v18_v1  ;;  %63 = vmatpush.msra.mxu1 %v18_v1  ;;  %v66_v6 = vld [vmem:[%s115_s2] ss:$0 sm:$0xff] }
   0x6   :  { %45 = vmatpush.msra.mxu0 %v17_v2  ;;  %64 = vmatpush.msra.mxu1 %v17_v2 }
   0x8   :  { %46 = vmatpush.msra.mxu0 %v16_v3  ;;  %65 = vmatpush.msra.mxu1 %v16_v3 }
   0x9   :  { %60 = vmatmul.msk.f32.vlgmr.msra.gmra.mxu0 %vm24_vm0, %v14_v4  ;;  %61 = vmatmul.msk.f32.vlgmr.msra.gmra.mxu1 %vm24_vm0, %v15_v5 }
  0x86   :  { %v48_v7 = vpop.f32.mrf.mxu0  ;;  %v51_v8 = vpop.f32.mrf.mxu1 }
  0x87   :  { %v49_v9 = vadd.f32 %v66_v6, %v48_v7  ;;  %v52_v10 = vadd.f32 %v66_v6, %v51_v8 }
  0x89   :  { %54 = vst.msk [vmem:[%s117_s3] sm:$0xff] %vm24_vm0, %v49_v9 }
  0x8a   :  { %55 = vst.msk [vmem:[%s117_s3 + $0x8] sm:$0xff] %vm24_vm0, %v52_v10 }

// kernel: encoder_layer.9
= control target key start
LH: loop header
LB: loop body
LE: loop exit
PB: predicated region body
PF: predicated region fallthrough
CT: control target
= control target key end

     0   :  { %vm23_vm0 = vcmask 261120   ;;  %v102_v8 = vmov 32.0   ;;  %s158_s0 = inlined_call_operand.vmem [shape: f32[16,32], index: 0, kind: input, shape index: {}]   ;;  %s159_s1 = inlined_call_operand.vmem [shape: f32[16,32], index: 1, kind: input, shape index: {}]   ;;  %s160_s2 = inlined_call_operand.vmem [shape: f32[1,32], index: 2, kind: input, shape index: {}]   ;;  %s161_s3 = inlined_call_operand.vmem [shape: f32[1,32], index: 3, kind: input, shape index: {}]   ;;  %s162_s4 = inlined_call_operand.vmem [shape: f32[16,32], index: 4, kind: output, shape index: {}]  }
   0x1   :  { %v17_v0 = vld [vmem:[%s158_s0] sm:$0xff]  ;;  %v18_v3 = vld [vmem:[%s158_s0 + $0x8] sm:$0xff]  ;;  %96 = vrcp.f32 %v102_v8 }
   0x2   :  { %v19_v1 = vld [vmem:[%s159_s1] sm:$0xff]  ;;  %v20_v4 = vld [vmem:[%s159_s1 + $0x8] sm:$0xff] }
   0x3   :  { %v21_v2 = vadd.f32 %v19_v1, %v17_v0  ;;  %v22_v6 = vadd.f32 %v20_v4, %v18_v3  ;;  %v94_v39 = vld [vmem:[%s160_s2] ss:$0 sm:$0xff] }
   0x4   :  { %v95_v42 = vld [vmem:[%s161_s3] ss:$0 sm:$0xff] }
   0x5   :  { %v24_v5 = vsel %vm23_vm0, %v21_v2, 0.0  ;;  %v27_v7 = vsel %vm23_vm0, %v22_v6, 0.0 }
   0x6   :  { %25 = vadd.xlane.f32.xlu0 %v24_v5 }
   0x7   :  { %v97_v9 = vpop.eup %96 }
   0x8   :  { %v31_v10 = vmul.f32 32.0, %v97_v9  ;;  %vm35_vm1 = vweird.f32 %v97_v9 }
   0xa   :  { %v32_v11 = vsub.f32 1.0, %v31_v10 }
   0xc   :  { %v33_v12 = vmul.f32 %v97_v9, %v32_v11 }
   0xe   :  { %28 = vadd.xlane.f32.xlu0 %v27_v7  ;;  %v34_v13 = vadd.f32 %v97_v9, %v33_v12 }
  0x10   :  { %v36_v14 = vsel %vm35_vm1, %v97_v9, %v34_v13 }
  0x79   :  { %v26_v15 = vpop.xlane.xlu0 %25 }
  0x7a   :  { %v37_v16 = vmul.f32 %v36_v14, %v26_v15 }
  0x7c   :  { %v39_v17 = vsub.f32 %v21_v2, %v37_v16 }
  0x7e   :  { %v41_v18 = vmul.f32 %v39_v17, %v39_v17 }
  0x80   :  { %v43_v19 = vsel %vm23_vm0, %v41_v18, 0.0 }
  0x81   :  { %44 = vadd.xlane.f32.xlu1 %v43_v19  ;;  %v29_v20 = vpop.xlane.xlu0 %28 }
  0x82   :  { %v38_v21 = vmul.f32 %v36_v14, %v29_v20 }
  0x84   :  { %v40_v22 = vsub.f32 %v22_v6, %v38_v21 }
  0x86   :  { %v42_v23 = vmul.f32 %v40_v22, %v40_v22 }
  0x88   :  { %v46_v24 = vsel %vm23_vm0, %v42_v23, 0.0 }
  0x89   :  { %47 = vadd.xlane.f32.xlu1 %v46_v24 }
  0xf4   :  { %v45_v25 = vpop.xlane.xlu1 %44 }
  0xf5   :  { %v49_v26 = vmul.f32 %v45_v25, %v36_v14 }
  0xf7   :  { %v51_v27 = vadd.f32 1e-05, %v49_v26 }
  0xf9   :  { %98 = vrsqrt.f32 %v51_v27  ;;  %vm59_vm3 = vweird.f32 %v51_v27 }
  0xfc   :  { %v48_v28 = vpop.xlane.xlu1 %47 }
  0xfd   :  { %v50_v29 = vmul.f32 %v48_v28, %v36_v14 }
  0xff   :  { %v99_v30 = vpop.eup %98  ;;  %v52_v31 = vadd.f32 1e-05, %v50_v29 }
 0x100   :  { %v54_v32 = vmul.f32 %v99_v30, %v51_v27  ;;  %vm60_vm2 = vweird.f32 %v99_v30 }
 0x101   :  { %100 = vrsqrt.f32 %v52_v31  ;;  %vm61_vm4 = vmor %vm59_vm3, %vm60_vm2  ;;  %vm69_vm6 = vweird.f32 %v52_v31 }
 0x102   :  { %v55_v33 = vmul.f32 %v99_v30, %v54_v32 }
 0x104   :  { %v56_v34 = vmul.f32 0.5, %v55_v33 }
 0x106   :  { %v57_v35 = vsub.f32 1.5, %v56_v34 }
 0x107   :  { %v101_v36 = vpop.eup %100 }
 0x108   :  { %v58_v37 = vmul.f32 %v99_v30, %v57_v35  ;;  %v64_v38 = vmul.f32 %v101_v36, %v52_v31  ;;  %vm70_vm5 = vweird.f32 %v101_v36 }
 0x109   :  { %vm71_vm7 = vmor %vm69_vm6, %vm70_vm5 }
 0x10a   :  { %v62_v40 = vsel %vm61_vm4, %v99_v30, %v58_v37  ;;  %v65_v41 = vmul.f32 %v101_v36, %v64_v38 }
 0x10b   :  { %v73_v43 = vmul.f32 %v62_v40, %v39_v17 }
 0x10c   :  { %v66_v44 = vmul.f32 0.5, %v65_v41 }
 0x10d   :  { %v79_v45 = vmul.f32 %v94_v39, %v73_v43 }
 0x10e   :  { %v67_v46 = vsub.f32 1.5, %v66_v44 }
 0x10f   :  { %v85_v47 = vadd.f32 %v95_v42, %v79_v45 }
 0x110   :  { %v68_v48 = vmul.f32 %v101_v36, %v67_v46 }
 0x111   :  { %87 = vst.msk [vmem:[%s162_s4] sm:$0xff] %vm23_vm0, %v85_v47 }
 0x112   :  { %v72_v49 = vsel %vm71_vm7, %v101_v36, %v68_v48 }
 0x113   :  { %v74_v50 = vmul.f32 %v72_v49, %v40_v22 }
 0x115   :  { %v80_v51 = vmul.f32 %v94_v39, %v74_v50 }
 0x117   :  { %v86_v52 = vadd.f32 %v95_v42, %v80_v51 }
 0x119   :  { %88 = vst.msk [vmem:[%s162_s4 + $0x8] sm:$0xff] %vm23_vm0, %v86_v52 }

// kernel: encoder_layer.11
= control target key start
LH: loop header
LB: loop body
LE: loop exit
PB: predicated region body
PF: predicated region fallthrough
CT: control target
= control target key end

     0   :  { %vm24_vm0 = vcmask 261120   ;;  %s202_s0 = inlined_call_operand.vmem [shape: f32[16,32], index: 0, kind: input, shape index: {}]   ;;  %s203_s1 = inlined_call_operand.vmem [shape: f32[16,32], index: 1, kind: input, shape index: {}]   ;;  %s204_s2 = inlined_call_operand.vmem [shape: f32[1,32], index: 2, kind: input, shape index: {}]   ;;  %s205_s3 = inlined_call_operand.vmem [shape: f32[1,32], index: 3, kind: input, shape index: {}]   ;;  %s206_s4 = inlined_call_operand.hbm [shape: f32[16,32], index: 4, kind: output, shape index: {}]  }
   0x1   :  { %v18_v0 = vld [vmem:[%s202_s0] sm:$0xff] }
   0x2   :  { %v20_v1 = vld [vmem:[%s203_s1] sm:$0xff] }
   0x3   :  { %v22_v2 = vadd.f32 %v20_v1, %v18_v0 }
   0x4   :  { %9 = vsyncpa [#allocation3], 0  ;;  %v19_v3 = vld [vmem:[%s202_s0 + $0x8] sm:$0xff]  ;;  %v146_v8 = vmov 32.0   ;;  %v112_v39 = vld [vmem:[%s204_s2] ss:$0 sm:$0xff] }
   0x5   :  { %v21_v4 = vld [vmem:[%s203_s1 + $0x8] sm:$0xff]  ;;  %v25_v5 = vsel %vm24_vm0, %v22_v2, 0.0  ;;  %114 = vrcp.f32 %v146_v8  ;;  %v113_v43 = vld [vmem:[%s205_s3] ss:$0 sm:$0xff]  ;;  %s147_s2 = smov [#allocation2]   ;;  %s96_s28 = sshll.u32 %s206_s4, 4  ;;  %s97_s28 = int_to_ptr.hbm [resolvable:$true] %s96_s28 }
   0x6   :  { %26 = vadd.xlane.f32.xlu0 %v25_v5  ;;  %v23_v6 = vadd.f32 %v21_v4, %v19_v3  ;;  %s94_s25 = sshll.u32 %s147_s2, 4  ;;  %s148_s3 = smov 128   ;;  %s95_s25 = int_to_ptr.vmem [resolvable:$true] %s94_s25 }
   0x7   :  { %s149_s29 = smov 8  }
   0x8   :  { %v28_v7 = vsel %vm24_vm0, %v23_v6, 0.0 }
   0xb   :  { %v115_v9 = vpop.eup %114 }
   0xc   :  { %v32_v10 = vmul.f32 32.0, %v115_v9  ;;  %vm36_vm1 = vweird.f32 %v115_v9 }
   0xe   :  { %29 = vadd.xlane.f32.xlu0 %v28_v7  ;;  %v33_v11 = vsub.f32 1.0, %v32_v10 }
  0x10   :  { %v34_v12 = vmul.f32 %v115_v9, %v33_v11 }
  0x12   :  { %v35_v13 = vadd.f32 %v115_v9, %v34_v12 }
  0x14   :  { %v37_v14 = vsel %vm36_vm1, %v115_v9, %v35_v13 }
  0x79   :  { %v27_v15 = vpop.xlane.xlu0 %26 }
  0x7a   :  { %v38_v16 = vmul.f32 %v37_v14, %v27_v15 }
  0x7c   :  { %v40_v17 = vsub.f32 %v22_v2, %v38_v16 }
  0x7e   :  { %v42_v18 = vmul.f32 %v40_v17, %v40_v17 }
  0x80   :  { %v44_v19 = vsel %vm24_vm0, %v42_v18, 0.0 }
  0x81   :  { %45 = vadd.xlane.f32.xlu1 %v44_v19  ;;  %v30_v20 = vpop.xlane.xlu0 %29 }
  0x82   :  { %v39_v21 = vmul.f32 %v37_v14, %v30_v20 }
  0x84   :  { %v41_v22 = vsub.f32 %v23_v6, %v39_v21 }
  0x86   :  { %v43_v23 = vmul.f32 %v41_v22, %v41_v22 }
  0x88   :  { %v47_v24 = vsel %vm24_vm0, %v43_v23, 0.0 }
  0x89   :  { %48 = vadd.xlane.f32.xlu1 %v47_v24 }
  0xf4   :  { %v46_v25 = vpop.xlane.xlu1 %45 }
  0xf5   :  { %v50_v26 = vmul.f32 %v46_v25, %v37_v14 }
  0xf7   :  { %v52_v27 = vadd.f32 1e-05, %v50_v26 }
  0xf9   :  { %116 = vrsqrt.f32 %v52_v27  ;;  %vm60_vm3 = vweird.f32 %v52_v27 }
  0xfc   :  { %v49_v28 = vpop.xlane.xlu1 %48 }
  0xfd   :  { %v51_v29 = vmul.f32 %v49_v28, %v37_v14 }
  0xff   :  { %v117_v30 = vpop.eup %116  ;;  %v53_v31 = vadd.f32 1e-05, %v51_v29 }
 0x100   :  { %v55_v32 = vmul.f32 %v117_v30, %v52_v27  ;;  %vm61_vm2 = vweird.f32 %v117_v30 }
 0x101   :  { %118 = vrsqrt.f32 %v53_v31  ;;  %vm62_vm4 = vmor %vm60_vm3, %vm61_vm2  ;;  %vm70_vm6 = vweird.f32 %v53_v31 }
 0x102   :  { %v56_v33 = vmul.f32 %v117_v30, %v55_v32 }
 0x104   :  { %v57_v34 = vmul.f32 0.5, %v56_v33 }
 0x106   :  { %v58_v35 = vsub.f32 1.5, %v57_v34 }
 0x107   :  { %v119_v36 = vpop.eup %118 }
 0x108   :  { %v59_v37 = vmul.f32 %v117_v30, %v58_v35  ;;  %v65_v38 = vmul.f32 %v119_v36, %v53_v31  ;;  %vm71_vm5 = vweird.f32 %v119_v36 }
 0x109   :  { %vm72_vm7 = vmor %vm70_vm6, %vm71_vm5 }
 0x10a   :  { %v63_v40 = vsel %vm62_vm4, %v117_v30, %v59_v37  ;;  %v66_v41 = vmul.f32 %v119_v36, %v65_v38 }
 0x10b   :  { %v74_v42 = vmul.f32 %v63_v40, %v40_v17 }
 0x10c   :  { %v67_v44 = vmul.f32 0.5, %v66_v41 }
 0x10d   :  { %v80_v45 = vmul.f32 %v112_v39, %v74_v42 }
 0x10e   :  { %v68_v46 = vsub.f32 1.5, %v67_v44 }
 0x10f   :  { %v86_v47 = vadd.f32 %v113_v43, %v80_v45 }
 0x110   :  { %v69_v48 = vmul.f32 %v119_v36, %v68_v46 }
 0x111   :  { %88 = vst.msk [vmem:[#allocation2] sm:$0xff] %vm24_vm0, %v86_v47 }
 0x112   :  { %v73_v49 = vsel %vm72_vm7, %v119_v36, %v69_v48 }
 0x113   :  { %v75_v50 = vmul.f32 %v73_v49, %v41_v22 }
 0x115   :  { %v81_v51 = vmul.f32 %v112_v39, %v75_v50 }
 0x117   :  { %v87_v52 = vadd.f32 %v113_v43, %v81_v51 }
 0x119   :  { %89 = vst.msk [vmem:[#allocation2 + $0x8] sm:$0xff] %vm24_vm0, %v87_v52 }
 0x11a   :  { %102 = dma.vmem_to_hbm [thread:$0]  %s95_s25, 256, %s97_s28, [#allocation3], %s148_s3, %s148_s3, %s149_s29  }
 0x11b   :  { %144 = dma.done.wait [#allocation3], 256  }
 0x11c   :  { %145 = vsyncadd [#allocation3], 4294967040 }
 0x11d   :  { %107 = vsyncpa [#allocation3], 1 }

// kernel: encoder_layer.10
= control target key start
LH: loop header
LB: loop body
LE: loop exit
PB: predicated region body
PF: predicated region fallthrough
CT: control target
= control target key end

     0   :  { %vm24_vm0 = vcmask 261120   ;;  %v152_v22 = vmov 0.0   ;;  %s269_s1 = inlined_call_operand.vmem [shape: f32[32,128], index: 1, kind: input, shape index: {}]   ;;  %s270_s3 = inlined_call_operand.vmem [shape: f32[128,32], index: 3, kind: input, shape index: {}]   ;;  %s271_s0 = inlined_call_operand.vmem [shape: f32[16,32], index: 0, kind: input, shape index: {}]   ;;  %s272_s2 = inlined_call_operand.vmem [shape: f32[1,128], index: 2, kind: input, shape index: {}]   ;;  %s273_s4 = inlined_call_operand.vmem [shape: f32[1,32], index: 4, kind: input, shape index: {}]   ;;  %s274_s5 = inlined_call_operand.vmem [shape: f32[16,32], index: 5, kind: output, shape index: {}]  }
   0x1   :  { %v32_v0 = vld [vmem:[%s269_s1 + $0x18] sm:$0xff]  ;;  %v31_v1 = vld [vmem:[%s269_s1 + $0x10] sm:$0xff]  ;;  %v30_v2 = vld [vmem:[%s269_s1 + $0x8] sm:$0xff]  ;;  %25 = vst.msk [vmem:[#allocation2] sm:$0xff] %vm24_vm0, %v152_v22 }
   0x2   :  { %56 = vmatpush.msra.mxu0 %v32_v0  ;;  %v86_v3 = vld [vmem:[%s270_s3 + $0x78] sm:$0xff]  ;;  %v85_v4 = vld [vmem:[%s270_s3 + $0x70] sm:$0xff]  ;;  %v29_v5 = vld [vmem:[%s269_s1] sm:$0xff]  ;;  %26 = vst.msk [vmem:[#allocation2 + $0x8] sm:$0xff] %vm24_vm0, %v152_v22 }
   0x3   :  { %87 = vmatpush.msra.mxu1 %v86_v3  ;;  %v84_v6 = vld [vmem:[%s270_s3 + $0x68] sm:$0xff]  ;;  %133 = vmatpush.msra.mxu2 %v86_v3  ;;  %v27_v7 = vld [vmem:[%s271_s0] sm:$0xff]  ;;  %v82_v9 = vld [vmem:[%s270_s3 + $0x58] sm:$0xff] }
   0x4   :  { %57 = vmatpush.msra.mxu0 %v31_v1  ;;  %v83_v8 = vld [vmem:[%s270_s3 + $0x60] sm:$0xff]  ;;  %v81_v10 = vld [vmem:[%s270_s3 + $0x50] sm:$0xff]  ;;  %v80_v11 = vld [vmem:[%s270_s3 + $0x48] sm:$0xff] }
   0x5   :  { %88 = vmatpush.msra.mxu1 %v85_v4  ;;  %134 = vmatpush.msra.mxu2 %v85_v4  ;;  %v28_v12 = vld [vmem:[%s271_s0 + $0x8] sm:$0xff]  ;;  %v79_v13 = vld [vmem:[%s270_s3 + $0x40] sm:$0xff]  ;;  %v78_v14 = vld [vmem:[%s270_s3 + $0x38] sm:$0xff] }
   0x6   :  { %58 = vmatpush.msra.mxu0 %v30_v2  ;;  %v77_v15 = vld [vmem:[%s270_s3 + $0x30] sm:$0xff]  ;;  %v76_v16 = vld [vmem:[%s270_s3 + $0x28] sm:$0xff]  ;;  %v75_v17 = vld [vmem:[%s270_s3 + $0x20] sm:$0xff] }
   0x7   :  { %89 = vmatpush.msra.mxu1 %v84_v6  ;;  %135 = vmatpush.msra.mxu2 %v84_v6  ;;  %v74_v18 = vld [vmem:[%s270_s3 + $0x18] sm:$0xff]  ;;  %v73_v19 = vld [vmem:[%s270_s3 + $0x10] sm:$0xff]  ;;  %v72_v20 = vld [vmem:[%s270_s3 + $0x8] sm:$0xff] }
   0x8   :  { %59 = vmatpush.msra.mxu0 %v29_v5  ;;  %v71_v21 = vld [vmem:[%s270_s3] sm:$0xff] }
   0x9   :  { %131 = vmatmul.msk.f32.vlgmr.msra.gmra.mxu0 %vm24_vm0, %v27_v7  ;;  %90 = vmatpush.msra.mxu1 %v83_v8  ;;  %v150_v23 = vld [vmem:[%s272_s2] ss:$0 sm:$0xff]  ;;  %v70_v36 = vld [vmem:[#allocation2 + $0x8] sm:$0xff] }
   0xa   :  { %136 = vmatpush.msra.mxu2 %v83_v8  ;;  %v69_v30 = vld [vmem:[#allocation2] sm:$0xff] }
   0xb   :  { %91 = vmatpush.msra.mxu1 %v82_v9  ;;  %v151_v33 = vld [vmem:[%s273_s4] ss:$0 sm:$0xff] }
   0xc   :  { %137 = vmatpush.msra.mxu2 %v82_v9 }
   0xd   :  { %92 = vmatpush.msra.mxu1 %v81_v10 }
   0xe   :  { %138 = vmatpush.msra.mxu2 %v81_v10 }
   0xf   :  { %93 = vmatpush.msra.mxu1 %v80_v11 }
  0x10   :  { %139 = vmatpush.msra.mxu2 %v80_v11 }
  0x11   :  { %132 = vmatmul.msk.f32.gmra.mxu0 %vm24_vm0, %v28_v12  ;;  %94 = vmatpush.msra.mxu1 %v79_v13 }
  0x12   :  { %140 = vmatpush.msra.mxu2 %v79_v13 }
  0x13   :  { %95 = vmatpush.msra.mxu1 %v78_v14 }
  0x14   :  { %141 = vmatpush.msra.mxu2 %v78_v14 }
  0x15   :  { %96 = vmatpush.msra.mxu1 %v77_v15 }
  0x16   :  { %142 = vmatpush.msra.mxu2 %v77_v15 }
  0x17   :  { %97 = vmatpush.msra.mxu1 %v76_v16 }
  0x18   :  { %143 = vmatpush.msra.mxu2 %v76_v16 }
  0x19   :  { %98 = vmatpush.msra.mxu1 %v75_v17 }
  0x1a   :  { %144 = vmatpush.msra.mxu2 %v75_v17 }
  0x1b   :  { %99 = vmatpush.msra.mxu1 %v74_v18 }
  0x1c   :  { %145 = vmatpush.msra.mxu2 %v74_v18 }
  0x1d   :  { %100 = vmatpush.msra.mxu1 %v73_v19 }
  0x1e   :  { %146 = vmatpush.msra.mxu2 %v73_v19 }
  0x1f   :  { %101 = vmatpush.msra.mxu1 %v72_v20 }
  0x20   :  { %147 = vmatpush.msra.mxu2 %v72_v20 }
  0x21   :  { %102 = vmatpush.msra.mxu1 %v71_v21 }
  0x22   :  { %148 = vmatpush.msra.mxu2 %v71_v21 }
  0x86   :  { %v61_v24 = vpop.f32.mrf.mxu0 }
  0x87   :  { %v62_v25 = vadd.f32 %v150_v23, %v61_v24 }
  0x89   :  { %v67_v26 = vmax.f32 %v62_v25, 0.0 }
  0x8b   :  { %103 = vmatmul.f32.vlgmr.msra.gmra.mxu1 %v67_v26 }
  0x8e   :  { %v64_v27 = vpop.f32.mrf.mxu0 }
  0x8f   :  { %v65_v28 = vadd.f32 %v150_v23, %v64_v27 }
  0x91   :  { %v68_v29 = vmax.f32 %v65_v28, 0.0 }
  0x93   :  { %106 = vmatmul.f32.vlgmr.msra.gmra.mxu2 %v68_v29 }
 0x108   :  { %v104_v31 = vpop.f32.mrf.mxu1 }
 0x109   :  { %v110_v32 = vadd.f32 %v104_v31, %v69_v30 }
 0x10b   :  { %112 = vst.msk [vmem:[#allocation2] sm:$0xff] %vm24_vm0, %v110_v32 }
 0x112   :  { %v117_v34 = vld [vmem:[#allocation2] sm:$0xff] }
 0x113   :  { %v123_v35 = vadd.f32 %v151_v33, %v117_v34 }
 0x115   :  { %125 = vst.msk [vmem:[%s274_s5] sm:$0xff] %vm24_vm0, %v123_v35 }
 0x116   :  { %v107_v37 = vpop.f32.mrf.mxu2 }
 0x117   :  { %v111_v38 = vadd.f32 %v107_v37, %v70_v36 }
 0x119   :  { %113 = vst.msk [vmem:[#allocation2 + $0x8] sm:$0xff] %vm24_vm0, %v111_v38 }
 0x120   :  { %v118_v39 = vld [vmem:[#allocation2 + $0x8] sm:$0xff] }
 0x121   :  { %v124_v40 = vadd.f32 %v151_v33, %v118_v39 }
 0x123   :  { %126 = vst.msk [vmem:[%s274_s5 + $0x8] sm:$0xff] %vm24_vm0, %v124_v40 }

</bundles_post_ra>
